<compile_context>
chip_gen: v5e
topology: v5e:2x2
jax: 0.10.0
libtpu: 0.0.40
codegen_flags: <defaults>
</compile_context>

<pallas_src>
import functools

import jax
import jax.numpy as jnp
from jax.experimental import pallas as pl
from jax.experimental.pallas import tpu as pltpu

LANE = 128


def _round_up(x, m):
    return ((x + m - 1) // m) * m


def actor_critic_kernel(x_ref, w1_ref, w2_ref, wh_ref, b_ref, out_ref,
                        *, h1, h2, n_actions, head_pad):
    # Biases packed along sublanes (lane-0 aligned slices are free):
    #   row 0: b1 (first h1 lanes), row 1: b2 (first h2 lanes),
    #   row 2: merged+padded head bias (first head_pad lanes).
    b1 = b_ref[0:1, :h1]
    b2 = b_ref[1:2, :h2]
    bh = b_ref[2:3, :head_pad]

    x = x_ref[...]

    # hidden layer 1 + ReLU
    h = jnp.dot(x, w1_ref[...], preferred_element_type=jnp.float32) + b1
    h = jnp.maximum(h, 0.0)

    # hidden layer 2 + ReLU
    h = jnp.dot(h, w2_ref[...], preferred_element_type=jnp.float32) + b2
    h = jnp.maximum(h, 0.0)

    # merged + lane-padded head:
    #   cols [0:n_actions]  -> action logits
    #   col  n_actions      -> state value
    #   cols > n_actions    -> zero padding (sliced off in the wrapper)
    head = jnp.dot(h, wh_ref[...], preferred_element_type=jnp.float32) + bh

    # log-softmax over the action columns only; everything else passes through.
    col = jax.lax.broadcasted_iota(jnp.int32, head.shape, 1)
    is_action = col < n_actions
    masked = jnp.where(is_action, head, -jnp.inf)
    m = jnp.max(masked, axis=-1, keepdims=True)
    e = jnp.exp(masked - m)                                   # non-action cols -> 0
    lse = m + jnp.log(jnp.sum(e, axis=-1, keepdims=True))
    out_ref[...] = jnp.where(is_action, head - lse, head)     # single dense store


def pack_params(params):
    """Pack ActorCritic parameters for the fused kernel.

    Call ONCE per parameter update (not per forward call): merges the value
    head into the action head, pads the merged head to a 128-lane slab, and
    packs all biases along sublanes (lane-0 aligned).
    """
    (w1, b1), (w2, b2), (wa, ba), (wv, bv) = params
    input_dim, h1 = w1.shape
    h2 = w2.shape[1]
    n_actions = wa.shape[1]
    n_heads = n_actions + 1
    head_pad = _round_up(max(n_heads, LANE), LANE)

    wh = jnp.concatenate([wa, wv], axis=1)                       # (h2, n_heads)
    wh = jnp.pad(wh, ((0, 0), (0, head_pad - n_heads)))          # (h2, head_pad)

    wb = max(_round_up(h1, LANE), _round_up(h2, LANE), head_pad)
    b_packed = jnp.zeros((8, wb), jnp.float32)
    b_packed = b_packed.at[0, :h1].set(b1.reshape(-1))
    b_packed = b_packed.at[1, :h2].set(b2.reshape(-1))
    b_packed = b_packed.at[2, :n_actions].set(ba.reshape(-1))
    b_packed = b_packed.at[2, n_actions:n_heads].set(bv.reshape(-1))

    dims = dict(input_dim=input_dim, h1=h1, h2=h2,
                n_actions=n_actions, head_pad=head_pad)
    return (w1, w2, wh, b_packed), dims


def actor_critic_forward(state, packed, *, dims, block_b=None):
    """Fused ActorCritic forward.

    state : (B, input_dim) f32
    packed: output of pack_params(params)
    Returns (action_log_probs (B, n_actions), state_value (B, 1)).
    """
    w1, w2, wh, b_packed = packed
    input_dim = dims["input_dim"]
    h1 = dims["h1"]
    h2 = dims["h2"]
    n_actions = dims["n_actions"]
    head_pad = dims["head_pad"]

    B = state.shape[0]

    # Batch tile: large (kernel is per-grid-step-overhead bound), multiple of 8,
    # and at least 2 grid steps when B permits so both v7x TensorCores are used.
    if block_b is None:
        if B <= 8:
            block_b = B
        else:
            block_b = min(1024, max(8, ((B // 2) // 8) * 8))
    grid_b = pl.cdiv(B, block_b)
    b_padded = grid_b * block_b
    x = state if b_padded == B else jnp.pad(state, ((0, b_padded - B), (0, 0)))

    kernel = functools.partial(actor_critic_kernel, h1=h1, h2=h2,
                               n_actions=n_actions, head_pad=head_pad)

    cost = pl.CostEstimate(
        flops=2 * b_padded * (input_dim * h1 + h1 * h2 + h2 * head_pad),
        transcendentals=b_padded * (n_actions + 1),
        bytes_accessed=4 * (b_padded * input_dim + input_dim * h1 + h1 * h2
                            + h2 * head_pad + b_packed.size
                            + b_padded * head_pad),
    )

    out = pl.pallas_call(
        kernel,
        out_shape=jax.ShapeDtypeStruct((b_padded, head_pad), jnp.float32),
        grid=(grid_b,),
        in_specs=[
            pl.BlockSpec((block_b, input_dim), lambda i: (i, 0)),  # x: batch-tiled
            pl.BlockSpec((input_dim, h1), lambda i: (0, 0)),       # weights stay
            pl.BlockSpec((h1, h2), lambda i: (0, 0)),              # VMEM-resident
            pl.BlockSpec((h2, head_pad), lambda i: (0, 0)),
            pl.BlockSpec(b_packed.shape, lambda i: (0, 0)),
        ],
        out_specs=pl.BlockSpec((block_b, head_pad), lambda i: (i, 0)),
        compiler_params=pltpu.CompilerParams(
            dimension_semantics=("parallel",)),
        cost_estimate=cost,
    )(x, w1, w2, wh, b_packed)

    log_probs = out[:B, :n_actions]
    state_value = out[:B, n_actions:n_actions + 1]
    return log_probs, state_value


def init_linear(key, fan_in, fan_out):
    """PyTorch nn.Linear default init: U(-1/sqrt(fan_in), 1/sqrt(fan_in))."""
    kw, kb = jax.random.split(key)
    bound = 1.0 / jnp.sqrt(jnp.float32(fan_in))
    # stored as (in, out) so the kernel can do x @ W
    w = jax.random.uniform(kw, (fan_in, fan_out), jnp.float32, -bound, bound)
    b = jax.random.uniform(kb, (1, fan_out), jnp.float32, -bound, bound)
    return w, b


if __name__ == "__main__":
    # Small shapes consistent with the module: input_dim=16, hl_size=[64, 32],
    # output_dim=4 actions. B=16 with block_b=8 -> 2-step batch grid (exercises
    # pipelining / megacore sharding).
    B, input_dim, hdim1, hdim2, n_actions = 16, 16, 64, 32, 4

    root = jax.random.PRNGKey(0)
    k_x, k1, k2, ka, kv, k_sample = jax.random.split(root, 6)

    params = (
        init_linear(k1, input_dim, hdim1),   # hidden_layers[0]
        init_linear(k2, hdim1, hdim2),       # hidden_layers[1]
        init_linear(ka, hdim2, n_actions),   # action_layer
        init_linear(kv, hdim2, 1),           # value_layer
    )

    state = jax.random.normal(k_x, (B, input_dim), jnp.float32)

    # Pack once per parameter update (hoisted out of the hot forward path).
    packed, dims = pack_params(params)

    fwd = jax.jit(functools.partial(actor_critic_forward, dims=dims, block_b=8))
    log_probs, state_value = fwd(state, packed)
    jax.block_until_ready((log_probs, state_value))

    # Pure-JAX reference of the module's forward math.
    (w1, b1), (w2, b2), (wa, ba), (wv, bv) = params
    h = jnp.maximum(state @ w1 + b1, 0.0)
    h = jnp.maximum(h @ w2 + b2, 0.0)
    value_ref = h @ wv + bv
    logp_ref = jax.nn.log_softmax(h @ wa + ba, axis=-1)

    assert log_probs.shape == (B, n_actions)
    assert state_value.shape == (B, 1)
    assert jnp.allclose(log_probs, logp_ref, atol=1e-5)
    assert jnp.allclose(state_value, value_ref, atol=1e-5)
    assert jnp.allclose(jnp.sum(jnp.exp(log_probs), axis=-1), 1.0, atol=1e-5)

    # Host-side glue: Categorical sampling + log_prob(action) (outside kernel).
    # jax.random.categorical consumes log-probs directly.
    actions = jax.random.categorical(k_sample, log_probs, axis=-1)
    chosen_log_probs = log_probs[jnp.arange(B), actions]
    jax.block_until_ready((actions, chosen_log_probs))

    # TODO(synk): calculateLoss()/clearMemory() are host-side episode bookkeeping
    # over Python lists; they stay outside the kernel (no Pallas equivalent needed).

    print("KERNEL_OK")
</pallas_src>

<mosaic_0001>
module attributes {stable_mosaic.version = 11 : i64} {
  func.func @actor_critic_kernel(%arg0: i32, %arg1: memref<8x16xf32, #tpu.memory_space<vmem>>, %arg2: memref<16x64xf32, #tpu.memory_space<vmem>>, %arg3: memref<64x32xf32, #tpu.memory_space<vmem>>, %arg4: memref<32x128xf32, #tpu.memory_space<vmem>>, %arg5: memref<8x128xf32, #tpu.memory_space<vmem>>, %arg6: memref<8x128xf32, #tpu.memory_space<vmem>>) attributes {dimension_semantics = [#tpu.dimension_semantics<parallel>], iteration_bounds = array<i64: 2>, scalar_prefetch = 0 : i64, scratch_operands = 0 : i64, tpu.core_type = #tpu.core_type<tc>, window_params = [{transform_indices = @transform_0, window_bounds = array<i64: 8, 16>}, {pipeline_mode = #tpu.pipeline_mode<synchronous>, transform_indices = @transform_1, window_bounds = array<i64: 16, 64>}, {pipeline_mode = #tpu.pipeline_mode<synchronous>, transform_indices = @transform_2, window_bounds = array<i64: 64, 32>}, {pipeline_mode = #tpu.pipeline_mode<synchronous>, transform_indices = @transform_3, window_bounds = array<i64: 32, 128>}, {pipeline_mode = #tpu.pipeline_mode<synchronous>, transform_indices = @transform_4, window_bounds = array<i64: 8, 128>}, {transform_indices = @transform_5, window_bounds = array<i64: 8, 128>}]} {
    %c0 = arith.constant 0 : index
    %c0_0 = arith.constant 0 : index
    %0 = vector.load %arg5[%c0, %c0_0] : memref<8x128xf32, #tpu.memory_space<vmem>>, vector<1x64xf32>
    %c1 = arith.constant 1 : index
    %c0_1 = arith.constant 0 : index
    %1 = vector.load %arg5[%c1, %c0_1] : memref<8x128xf32, #tpu.memory_space<vmem>>, vector<1x32xf32>
    %c2 = arith.constant 2 : index
    %c0_2 = arith.constant 0 : index
    %2 = vector.load %arg5[%c2, %c0_2] : memref<8x128xf32, #tpu.memory_space<vmem>>, vector<1x128xf32>
    %c0_3 = arith.constant 0 : index
    %c0_4 = arith.constant 0 : index
    %3 = vector.load %arg1[%c0_3, %c0_4] : memref<8x16xf32, #tpu.memory_space<vmem>>, vector<8x16xf32>
    %c0_5 = arith.constant 0 : index
    %c0_6 = arith.constant 0 : index
    %4 = vector.load %arg2[%c0_5, %c0_6] : memref<16x64xf32, #tpu.memory_space<vmem>>, vector<16x64xf32>
    %cst = arith.constant dense<0.000000e+00> : vector<8x64xf32>
    %5 = tpu.matmul %3, %4, %cst {dimension_numbers = #tpu.dot_dimension_numbers<[1], [0], [0], [1], [0, 0, 1, 1], [], []>} : vector<8x16xf32>, vector<16x64xf32>, vector<8x64xf32> -> vector<8x64xf32>
    %6 = vector.broadcast %0 : vector<1x64xf32> to vector<8x64xf32>
    %7 = arith.addf %5, %6 : vector<8x64xf32>
    %cst_7 = arith.constant 0.000000e+00 : f32
    %8 = vector.broadcast %cst_7 : f32 to vector<8x64xf32>
    %9 = arith.maximumf %7, %8 : vector<8x64xf32>
    %c0_8 = arith.constant 0 : index
    %c0_9 = arith.constant 0 : index
    %10 = vector.load %arg3[%c0_8, %c0_9] : memref<64x32xf32, #tpu.memory_space<vmem>>, vector<64x32xf32>
    %cst_10 = arith.constant dense<0.000000e+00> : vector<8x32xf32>
    %11 = tpu.matmul %9, %10, %cst_10 {dimension_numbers = #tpu.dot_dimension_numbers<[1], [0], [0], [1], [0, 0, 1, 1], [], []>} : vector<8x64xf32>, vector<64x32xf32>, vector<8x32xf32> -> vector<8x32xf32>
    %12 = vector.broadcast %1 : vector<1x32xf32> to vector<8x32xf32>
    %13 = arith.addf %11, %12 : vector<8x32xf32>
    %cst_11 = arith.constant 0.000000e+00 : f32
    %14 = vector.broadcast %cst_11 : f32 to vector<8x32xf32>
    %15 = arith.maximumf %13, %14 : vector<8x32xf32>
    %c0_12 = arith.constant 0 : index
    %c0_13 = arith.constant 0 : index
    %16 = vector.load %arg4[%c0_12, %c0_13] : memref<32x128xf32, #tpu.memory_space<vmem>>, vector<32x128xf32>
    %cst_14 = arith.constant dense<0.000000e+00> : vector<8x128xf32>
    %17 = tpu.matmul %15, %16, %cst_14 {dimension_numbers = #tpu.dot_dimension_numbers<[1], [0], [0], [1], [0, 0, 1, 1], [], []>} : vector<8x32xf32>, vector<32x128xf32>, vector<8x128xf32> -> vector<8x128xf32>
    %18 = vector.broadcast %2 : vector<1x128xf32> to vector<8x128xf32>
    %19 = arith.addf %17, %18 : vector<8x128xf32>
    %20 = tpu.iota {dimensions = array<i32: 1>} : vector<8x128xi32>
    %c4_i32 = arith.constant 4 : i32
    %21 = vector.broadcast %c4_i32 : i32 to vector<8x128xi32>
    %22 = arith.cmpi slt, %20, %21 : vector<8x128xi32>
    %cst_15 = arith.constant 0xFF800000 : f32
    %23 = vector.broadcast %cst_15 : f32 to vector<8x128xf32>
    %24 = arith.select %22, %19, %23 : vector<8x128xi1>, vector<8x128xf32>
    %cst_16 = arith.constant dense<0xFF800000> : vector<8xf32>
    %25 = vector.multi_reduction <maximumf>, %24, %cst_16 [1] : vector<8x128xf32> to vector<8xf32>
    %26 = vector.shape_cast %25 : vector<8xf32> to vector<8x1xf32>
    %27 = vector.broadcast %26 : vector<8x1xf32> to vector<8x128xf32>
    %28 = arith.subf %24, %27 : vector<8x128xf32>
    %29 = math.exp %28 : vector<8x128xf32>
    %cst_17 = arith.constant dense<0.000000e+00> : vector<8xf32>
    %30 = vector.multi_reduction <add>, %29, %cst_17 [1] : vector<8x128xf32> to vector<8xf32>
    %31 = vector.shape_cast %30 : vector<8xf32> to vector<8x1xf32>
    %32 = math.log %31 : vector<8x1xf32>
    %33 = arith.addf %26, %32 : vector<8x1xf32>
    %34 = vector.broadcast %33 : vector<8x1xf32> to vector<8x128xf32>
    %35 = arith.subf %19, %34 : vector<8x128xf32>
    %36 = arith.select %22, %35, %19 : vector<8x128xi1>, vector<8x128xf32>
    %c0_18 = arith.constant 0 : index
    %c0_19 = arith.constant 0 : index
    %37 = vector.load %arg6[%c0_18, %c0_19] : memref<8x128xf32, #tpu.memory_space<vmem>>, vector<8x128xf32>
    tpu.vector_store %arg6[%c0_18, %c0_19], %36 {strides = array<i32>} : memref<8x128xf32, #tpu.memory_space<vmem>>, vector<8x128xf32>,
    return
  }
  func.func @transform_0(%arg0: i32) -> (i32, i32) {
    %c0_i32 = arith.constant 0 : i32
    %c0_i32_0 = arith.constant 0 : i32
    return %arg0, %c0_i32 : i32, i32
  }
  func.func @transform_1(%arg0: i32) -> (i32, i32) {
    %c0_i32 = arith.constant 0 : i32
    %c0_i32_0 = arith.constant 0 : i32
    %c0_i32_1 = arith.constant 0 : i32
    return %c0_i32, %c0_i32_0 : i32, i32
  }
  func.func @transform_2(%arg0: i32) -> (i32, i32) {
    %c0_i32 = arith.constant 0 : i32
    %c0_i32_0 = arith.constant 0 : i32
    %c0_i32_1 = arith.constant 0 : i32
    return %c0_i32, %c0_i32_0 : i32, i32
  }
  func.func @transform_3(%arg0: i32) -> (i32, i32) {
    %c0_i32 = arith.constant 0 : i32
    %c0_i32_0 = arith.constant 0 : i32
    %c0_i32_1 = arith.constant 0 : i32
    return %c0_i32, %c0_i32_0 : i32, i32
  }
  func.func @transform_4(%arg0: i32) -> (i32, i32) {
    %c0_i32 = arith.constant 0 : i32
    %c0_i32_0 = arith.constant 0 : i32
    %c0_i32_1 = arith.constant 0 : i32
    return %c0_i32, %c0_i32_0 : i32, i32
  }
  func.func @transform_5(%arg0: i32) -> (i32, i32) {
    %c0_i32 = arith.constant 0 : i32
    %c0_i32_0 = arith.constant 0 : i32
    return %arg0, %c0_i32 : i32, i32
  }
}

</mosaic_0001>

<bundles_post_ra>
// kernel: actor_critic_forward.1
= control target key start
LH: loop header
LB: loop body
LE: loop exit
PB: predicated region body
PF: predicated region fallthrough
CT: control target
= control target key end

     0   :  { %s450_s18 = smov 0   ;;  %s527_s0 = inlined_call_operand.vmem [shape: f32[16,16], index: 0, kind: input, shape index: {}]   ;;  %s528_s1 = inlined_call_operand.vmem [shape: f32[16,64], index: 1, kind: input, shape index: {}]   ;;  %s529_s2 = inlined_call_operand.vmem [shape: f32[64,32], index: 2, kind: input, shape index: {}]   ;;  %s530_s3 = inlined_call_operand.vmem [shape: f32[32,128], index: 3, kind: input, shape index: {}]   ;;  %s531_s4 = inlined_call_operand.vmem [shape: f32[8,128], index: 4, kind: input, shape index: {}]   ;;  %s532_s5 = inlined_call_operand.vmem [shape: f32[16,128], index: 5, kind: output, shape index: {}]  }
   0x1 LB: > { %s385_s19 = sadd.s32 4294967295, %s418_s18   ;;  %p389_p0 = scmp.ge.s32.totalorder %s418_s18, 1  ;;  %s418_s18 = sphi %s450_s18, %s15_s18  }
   0x2   : > { %p186_p1 = scmp.lt.s32.totalorder %s418_s18, 3 }
   0x4   : > { %p187_p2 = pnand %p389_p0, %p186_p1 }
   0x5   : > { %p212_p3 = scmp.lt.s32.totalorder (!%p187_p2), %s385_s19, 1 }
   0x6   : > { %190 = sbr.rel (%p187_p2) target bundleno = 668 (0x29c), region = 40 }
   0xb   : > { %v225_v0 = vld [vmem:[%s528_s1 + $0x8] sm:$0xff]  ;;  %v224_v1 = vld [vmem:[%s528_s1] sm:$0xff]  ;;  %v259_v2 = vld [vmem:[%s529_s2 + $0x38] sm:$0xff]  ;;  %s534_s19 = smov (!%p212_p3, %s385_s19), 1  ;;  %vm227_vm0 = vcmask 130048   ;;  %vm261_vm1 = vcmask 523264   ;;  %v315_v23 = vlaneseq }
   0xc   : > { %245 = vmatpush.msra.mxu0 %v225_v0  ;;  %273 = vmatpush.msra.mxu1 %v259_v2  ;;  %v258_v3 = vld [vmem:[%s529_s2 + $0x30] sm:$0xff]  ;;  %v257_v4 = vld [vmem:[%s529_s2 + $0x28] sm:$0xff]  ;;  %s390_s30 = sshll.u32 %s534_s19, 3  ;;  %v256_v5 = vld [vmem:[%s529_s2 + $0x20] sm:$0xff]  ;;  %vm291_vm2 = vcmask 261120  }
   0xd   : > { %s215_s10 = scalar_lea.vmem %s527_s0, %s390_s30  ;;  %v255_v7 = vld [vmem:[%s529_s2 + $0x18] sm:$0xff]  ;;  %v254_v8 = vld [vmem:[%s529_s2 + $0x10] sm:$0xff]  ;;  %v253_v9 = vld [vmem:[%s529_s2 + $0x8] sm:$0xff]  ;;  %v316_v24 = vand.u32 127, %v315_v23  ;;  %s219_s13 = scalar_lea.vmem %s532_s5, %s390_s30 }
   0xe   : > { %246 = vmatpush.msra.mxu0 %v224_v1  ;;  %274 = vmatpush.msra.mxu1 %v258_v3  ;;  %v223_v6 = vld [vmem:[%s215_s10] sm:$0xff]  ;;  %v289_v11 = vld [vmem:[%s530_s3 + $0x18] sm:$0xff]  ;;  %v288_v16 = vld [vmem:[%s530_s3 + $0x10] sm:$0xff] }
   0xf   : > { %392 = vmatmul.msk.f32.vlgmr.msra.gmra.mxu0 %vm227_vm0, %v223_v6  ;;  %v252_v10 = vld [vmem:[%s529_s2] sm:$0xff]  ;;  %307 = vmatpush.msra.mxu2 %v289_v11  ;;  %v287_v17 = vld [vmem:[%s530_s3 + $0x8] sm:$0xff]  ;;  %vm317_vm3 = vcmp.lt.s32.totalorder %v316_v24, 4 }
  0x10   : > { %275 = vmatpush.msra.mxu1 %v257_v4  ;;  %v405_v12 = vld [vmem:[%s531_s4] ss:$0 sm:$0xff]  ;;  %v406_v19 = vld [vmem:[%s531_s4 + $0x1] ss:$0 sm:$0xff]  ;;  %v407_v25 = vld [vmem:[%s531_s4 + $0x2] ss:$0 sm:$0xff] }
  0x11   : > { %308 = vmatpush.msra.mxu2 %v288_v16  ;;  %v286_v18 = vld [vmem:[%s530_s3] sm:$0xff] }
  0x12   : > { %276 = vmatpush.msra.mxu1 %v256_v5 }
  0x13   : > { %309 = vmatpush.msra.mxu2 %v287_v17 }
  0x14   : > { %277 = vmatpush.msra.mxu1 %v255_v7 }
  0x15   : > { %310 = vmatpush.msra.mxu2 %v286_v18 }
  0x16   : > { %278 = vmatpush.msra.mxu1 %v254_v8 }
  0x18   : > { %279 = vmatpush.msra.mxu1 %v253_v9 }
  0x1a   : > { %280 = vmatpush.msra.mxu1 %v252_v10 }
  0x8c   : > { %v248_v13 = vpop.f32.mrf.mxu0 }
  0x8d   : > { %v249_v14 = vadd.f32 %v405_v12, %v248_v13 }
  0x8f   : > { %v251_v15 = vmax.f32 %v249_v14, 0.0 }
  0x91   : > { %393 = vmatmul.msk.f32.vlgmr.msra.gmra.mxu1 %vm261_vm1, %v251_v15 }
 0x10e   : > { %v282_v20 = vpop.f32.mrf.mxu1 }
 0x10f   : > { %v283_v21 = vadd.f32 %v406_v19, %v282_v20 }
 0x111   : > { %v285_v22 = vmax.f32 %v283_v21, 0.0 }
 0x113   : > { %394 = vmatmul.msk.f32.vlgmr.msra.gmra.mxu2 %vm291_vm2, %v285_v22 }
 0x196   : > { %v312_v26 = vpop.f32.mrf.mxu2 }
 0x197   : > { %v313_v27 = vadd.f32 %v407_v25, %v312_v26 }
 0x199   : > { %v318_v28 = vsel %vm317_vm3, %v313_v27, -inf }
 0x19a   : > { %319 = vmax.xlane.f32.xlu0 %v318_v28 }
 0x20d   : > { %v320_v29 = vpop.xlane.xlu0 %319 }
 0x20e   : > { %v321_v30 = vsub.f32 %v318_v28, %v320_v29 }
 0x210   : > { %v322_v31 = vmul.f32 1.442695, %v321_v30 }
 0x212   : > { %408 = vpow2.f32 %v322_v31 }
 0x218   : > { %v409_v32 = vpop.eup %408 }
 0x219   : > { %324 = vadd.xlane.f32.xlu0 %v409_v32 }
 0x28c   : > { %v325_v33 = vpop.xlane.xlu0 %324 }
 0x28d   : > { %410 = vlog2.f32 %v325_v33 }
 0x293   : > { %v411_v34 = vpop.eup %410 }
 0x294   : > { %v327_v35 = vmul.f32 0.6931472, %v411_v34 }
 0x296   : > { %v328_v36 = vadd.f32 %v327_v35, %v320_v29 }
 0x298   : > { %v329_v37 = vsub.f32 %v313_v27, %v328_v36 }
 0x29a   : > { %v330_v38 = vsel %vm317_vm3, %v329_v37, %v313_v27 }
 0x29b   : > { %331 = vst [vmem:[%s219_s13] sm:$0xff] %v330_v38 }
 0x29c PF: > { %s15_s18 = sadd.s32 1, %s418_s18  }
 0x29d   : > { %p12_p4 = scmp.ge.s32.totalorder %s15_s18, 4  }
 0x29f   :  { %14 = sbr.rel (!%p12_p4) target bundleno = 1 (0x1), region = 70 }

</bundles_post_ra>
